<compile_context>
chip_gen: v7x
topology: tpu7x:2x2x1
jax: 0.10.0
libtpu: 0.0.40
codegen_flags: <defaults>
</compile_context>

<pallas_src>
import functools

import jax
import jax.numpy as jnp
from jax import lax
from jax.experimental import pallas as pl
from jax.experimental.pallas import tpu as pltpu


def _round_up(x, m):
    return (x + m - 1) // m * m


def _static_int_pow(base, g):
    """Exponentiation-by-squaring, fully unrolled at trace time (g static int)."""
    result = None
    while g:
        if g & 1:
            result = base if result is None else result * base
        g >>= 1
        if g:
            base = base * base
    if result is None:  # g == 0
        return jnp.ones_like(base)
    return result


def focal_loss_kernel(pred_ref, target_ref, alpha_ref, out_ref, *,
                      gamma, n_total, n_tile):
    # pred_ref:   (C, T) logits, native dtype (upcast here)
    # target_ref: (1, T) int8/int32 labels (lane-dense)
    # alpha_ref:  (C, 1) f32 per-class alpha
    # out_ref:    (1, 128) f32 -- this block's partial sum in lane 0
    x = pred_ref[...].astype(jnp.float32)                      # (C, T)
    tgt = target_ref[...].astype(jnp.int32)                    # (1, T)
    alpha = alpha_ref[...]                                     # (C, 1)

    c, t = x.shape
    row_ids = lax.broadcasted_iota(jnp.int32, (c, t), 0)
    onehot = row_ids == tgt                                    # (C, T)

    # Numerically-stable softmax stats; reductions are over the small class
    # axis (sublanes).  All per-example results are lane-dense (1, T).
    row_max = jnp.max(x, axis=0, keepdims=True)                # (1, T)
    e = jnp.exp(x - row_max)                                   # (C, T) EUP exp
    s = jnp.sum(e, axis=0, keepdims=True)                      # (1, T)
    picked = jnp.sum(jnp.where(onehot, x, 0.0), axis=0, keepdims=True)
    alpha_t = jnp.sum(jnp.where(onehot, alpha, 0.0), axis=0, keepdims=True)

    ce = jnp.log(s) + row_max - picked                         # (1, T)
    pt = jnp.exp(-ce)                                          # (1, T) EUP exp

    one_minus_pt = jnp.maximum(1.0 - pt, 0.0)                  # clamp: no NaN hazard
    if float(gamma) == float(int(gamma)) and int(gamma) >= 0:
        mod = _static_int_pow(one_minus_pt, int(gamma))        # VPU muls, no EUP pow
    else:
        mod = one_minus_pt ** gamma

    focal = alpha_t * mod * ce                                 # (1, T)

    # Mask lanes beyond the true batch size (no explicit pad in the wrapper;
    # last-block OOB lanes contain garbage that must not reach the sum).
    col = lax.broadcasted_iota(jnp.int32, (1, t), 1) + pl.program_id(0) * n_tile
    focal = jnp.where(col < n_total, focal, 0.0)

    block_sum = jnp.sum(focal)                                 # scalar partial sum
    lane = lax.broadcasted_iota(jnp.int32, (1, 128), 1)
    out_ref[...] = jnp.where(lane == 0, block_sum, 0.0)


def focal_loss(pred, target, alpha_vec, gamma=2.0, tile_n=65536):
    """pred: (N, C) logits (any float dtype); target: (N,) int labels;
    alpha_vec: (C,) float32.  Returns scalar mean focal loss."""
    n, c = pred.shape

    # Lane-dense batch tile (multiple of 128).  Default 64K lanes (~1.3 MB of
    # f32 logits per block at C=5) keeps the per-step overhead negligible;
    # cap so large batches still produce >= 2 blocks (v7x megacore sharding).
    n_tile = max(128, min(_round_up(int(tile_n), 128), _round_up(n, 128)))
    if n > 2 * 128:
        n_tile = min(n_tile, _round_up(pl.cdiv(n, 2), 128))
    num_blocks = pl.cdiv(n, n_tile)

    # Layout plumbing: batch -> lanes, classes -> sublanes.  Native dtype is
    # kept (bf16 halves the HBM read).  No pad; allow_input_fusion lets XLA
    # fold the transpose into the pallas_call input fetch where supported.
    pred_t = jnp.transpose(pred)                                       # (C, N)
    tgt_dtype = jnp.int8 if c <= 127 else jnp.int32
    tgt_2d = target.astype(tgt_dtype).reshape(1, n)                    # (1, N)
    alpha_2d = alpha_vec.astype(jnp.float32).reshape(c, 1)             # (C, 1)

    kernel = functools.partial(focal_loss_kernel, gamma=gamma,
                               n_total=n, n_tile=n_tile)
    partials = pl.pallas_call(
        kernel,
        out_shape=jax.ShapeDtypeStruct((1, num_blocks * 128), jnp.float32),
        grid=(num_blocks,),
        in_specs=[
            pl.BlockSpec((c, n_tile), lambda i: (0, i)),   # logits block
            pl.BlockSpec((1, n_tile), lambda i: (0, i)),   # labels block
            pl.BlockSpec((c, 1), lambda i: (0, 0)),        # alpha (replicated)
        ],
        out_specs=pl.BlockSpec((1, 128), lambda i: (0, i)),  # per-block partial
        compiler_params=pltpu.CompilerParams(
            dimension_semantics=("parallel",),
            vmem_limit_bytes=32 * 1024 * 1024,
            allow_input_fusion=[True, True, True],
        ),
    )(pred_t, tgt_2d, alpha_2d)

    # reduction == 'mean': sum the per-block partials, divide by the TRUE N.
    return jnp.sum(partials) / jnp.float32(n)


def focal_loss_ref(pred, target, alpha_vec, gamma=2.0):
    """Pure-JAX reference mirroring the PyTorch forward."""
    p32 = pred.astype(jnp.float32)
    lse = jax.scipy.special.logsumexp(p32, axis=1)
    picked = jnp.take_along_axis(p32, target[:, None], axis=1)[:, 0]
    ce = lse - picked
    pt = jnp.exp(-ce)
    alpha_t = alpha_vec[target]
    focal = alpha_t * (1.0 - pt) ** gamma * ce
    return jnp.mean(focal)


if __name__ == "__main__":
    # FocalLoss(alpha=0.25, gamma=2.0, num_classes=5, reduction='mean')
    ALPHA = 0.25
    GAMMA = 2.0
    NUM_CLASSES = 5
    BATCH = 8

    key = jax.random.PRNGKey(0)
    kp, kt = jax.random.split(key)
    pred = jax.random.normal(kp, (BATCH, NUM_CLASSES), dtype=jnp.float32)
    target = jax.random.randint(kt, (BATCH,), 0, NUM_CLASSES, dtype=jnp.int32)
    alpha_vec = jnp.ones((NUM_CLASSES,), dtype=jnp.float32) * ALPHA  # deterministic init

    out = focal_loss(pred, target, alpha_vec, gamma=GAMMA)
    out = jax.block_until_ready(out)

    ref = focal_loss_ref(pred, target, alpha_vec, gamma=GAMMA)
    assert jnp.allclose(out, ref, rtol=1e-5, atol=1e-6), (out, ref)

    print("KERNEL_OK")
</pallas_src>

<mosaic_0001>
module attributes {stable_mosaic.version = 11 : i64} {
  func.func @focal_loss_kernel(%arg0: i32, %arg1: memref<5x128xf32, #tpu.memory_space<vmem>>, %arg2: memref<1x128xi8, #tpu.memory_space<vmem>>, %arg3: memref<5x1xf32, #tpu.memory_space<vmem>>, %arg4: memref<1x128xf32, #tpu.memory_space<vmem>>) attributes {dimension_semantics = [#tpu.dimension_semantics<parallel>], iteration_bounds = array<i64: 1>, scalar_prefetch = 0 : i64, scratch_operands = 0 : i64, tpu.core_type = #tpu.core_type<tc>, window_params = [{transform_indices = @transform_0, window_bounds = array<i64: 5, 128>}, {transform_indices = @transform_1, window_bounds = array<i64: 1, 128>}, {pipeline_mode = #tpu.pipeline_mode<synchronous>, transform_indices = @transform_2, window_bounds = array<i64: 5, 1>}, {transform_indices = @transform_3, window_bounds = array<i64: 1, 128>}]} {
    %c0 = arith.constant 0 : index
    %c0_0 = arith.constant 0 : index
    %0 = vector.load %arg1[%c0, %c0_0] : memref<5x128xf32, #tpu.memory_space<vmem>>, vector<5x128xf32>
    %c0_1 = arith.constant 0 : index
    %c0_2 = arith.constant 0 : index
    %1 = vector.load %arg2[%c0_1, %c0_2] : memref<1x128xi8, #tpu.memory_space<vmem>>, vector<1x128xi8>
    %2 = arith.extsi %1 : vector<1x128xi8> to vector<1x128xi32>
    %c0_3 = arith.constant 0 : index
    %c0_4 = arith.constant 0 : index
    %3 = vector.load %arg3[%c0_3, %c0_4] : memref<5x1xf32, #tpu.memory_space<vmem>>, vector<5x1xf32>
    %4 = tpu.iota {dimensions = array<i32: 0>} : vector<5x128xi32>
    %5 = vector.broadcast %2 : vector<1x128xi32> to vector<5x128xi32>
    %6 = arith.cmpi eq, %4, %5 : vector<5x128xi32>
    %cst = arith.constant dense<0xFF800000> : vector<128xf32>
    %7 = vector.multi_reduction <maximumf>, %0, %cst [0] : vector<5x128xf32> to vector<128xf32>
    %8 = vector.shape_cast %7 : vector<128xf32> to vector<1x128xf32>
    %9 = vector.broadcast %8 : vector<1x128xf32> to vector<5x128xf32>
    %10 = arith.subf %0, %9 : vector<5x128xf32>
    %11 = math.exp %10 : vector<5x128xf32>
    %cst_5 = arith.constant dense<0.000000e+00> : vector<128xf32>
    %12 = vector.multi_reduction <add>, %11, %cst_5 [0] : vector<5x128xf32> to vector<128xf32>
    %13 = vector.shape_cast %12 : vector<128xf32> to vector<1x128xf32>
    %cst_6 = arith.constant 0.000000e+00 : f32
    %14 = vector.broadcast %cst_6 : f32 to vector<5x128xf32>
    %15 = arith.select %6, %0, %14 : vector<5x128xi1>, vector<5x128xf32>
    %cst_7 = arith.constant dense<0.000000e+00> : vector<128xf32>
    %16 = vector.multi_reduction <add>, %15, %cst_7 [0] : vector<5x128xf32> to vector<128xf32>
    %17 = vector.shape_cast %16 : vector<128xf32> to vector<1x128xf32>
    %cst_8 = arith.constant 0.000000e+00 : f32
    %18 = vector.shape_cast %3 : vector<5x1xf32> to vector<5x1xf32>
    %19 = vector.broadcast %18 : vector<5x1xf32> to vector<5x128xf32>
    %20 = vector.broadcast %cst_8 : f32 to vector<5x128xf32>
    %21 = arith.select %6, %19, %20 : vector<5x128xi1>, vector<5x128xf32>
    %cst_9 = arith.constant dense<0.000000e+00> : vector<128xf32>
    %22 = vector.multi_reduction <add>, %21, %cst_9 [0] : vector<5x128xf32> to vector<128xf32>
    %23 = vector.shape_cast %22 : vector<128xf32> to vector<1x128xf32>
    %24 = math.log %13 : vector<1x128xf32>
    %25 = arith.addf %24, %8 : vector<1x128xf32>
    %26 = arith.subf %25, %17 : vector<1x128xf32>
    %cst_10 = arith.constant 0.000000e+00 : f32
    %27 = vector.broadcast %cst_10 : f32 to vector<1x128xf32>
    %28 = arith.subf %27, %26 : vector<1x128xf32>
    %29 = math.exp %28 : vector<1x128xf32>
    %cst_11 = arith.constant 1.000000e+00 : f32
    %30 = vector.broadcast %cst_11 : f32 to vector<1x128xf32>
    %31 = arith.subf %30, %29 : vector<1x128xf32>
    %cst_12 = arith.constant 0.000000e+00 : f32
    %32 = vector.broadcast %cst_12 : f32 to vector<1x128xf32>
    %33 = arith.maximumf %31, %32 : vector<1x128xf32>
    %34 = arith.mulf %33, %33 : vector<1x128xf32>
    %35 = arith.mulf %23, %34 : vector<1x128xf32>
    %36 = arith.mulf %35, %26 : vector<1x128xf32>
    %37 = tpu.iota {dimensions = array<i32: 1>} : vector<1x128xi32>
    %c128_i32 = arith.constant 128 : i32
    %38 = arith.muli %arg0, %c128_i32 : i32
    %39 = vector.broadcast %38 : i32 to vector<1x128xi32>
    %40 = arith.addi %37, %39 : vector<1x128xi32>
    %c8_i32 = arith.constant 8 : i32
    %41 = vector.broadcast %c8_i32 : i32 to vector<1x128xi32>
    %42 = arith.cmpi slt, %40, %41 : vector<1x128xi32>
    %cst_13 = arith.constant 0.000000e+00 : f32
    %43 = vector.broadcast %cst_13 : f32 to vector<1x128xf32>
    %44 = arith.select %42, %36, %43 : vector<1x128xi1>, vector<1x128xf32>
    %45 = vector.shape_cast %44 : vector<1x128xf32> to vector<1x1x128xf32>
    %cst_14 = arith.constant dense<0.000000e+00> : vector<1xf32>
    %46 = vector.multi_reduction <add>, %45, %cst_14 [1, 2] : vector<1x1x128xf32> to vector<1xf32>
    %47 = vector.shape_cast %46 : vector<1xf32> to vector<1x1x1xf32>
    %48 = vector.extract %47[0, 0, 0] : f32 from vector<1x1x1xf32>
    %49 = tpu.iota {dimensions = array<i32: 1>} : vector<1x128xi32>
    %c0_i32 = arith.constant 0 : i32
    %50 = vector.broadcast %c0_i32 : i32 to vector<1x128xi32>
    %51 = arith.cmpi eq, %49, %50 : vector<1x128xi32>
    %cst_15 = arith.constant 0.000000e+00 : f32
    %52 = vector.broadcast %48 : f32 to vector<1x128xf32>
    %53 = vector.broadcast %cst_15 : f32 to vector<1x128xf32>
    %54 = arith.select %51, %52, %53 : vector<1x128xi1>, vector<1x128xf32>
    %c0_16 = arith.constant 0 : index
    %c0_17 = arith.constant 0 : index
    %55 = vector.load %arg4[%c0_16, %c0_17] : memref<1x128xf32, #tpu.memory_space<vmem>>, vector<1x128xf32>
    tpu.vector_store %arg4[%c0_16, %c0_17], %54 {strides = array<i32>} : memref<1x128xf32, #tpu.memory_space<vmem>>, vector<1x128xf32>,
    return
  }
  func.func @transform_0(%arg0: i32) -> (i32, i32) {
    %c0_i32 = arith.constant 0 : i32
    %c0_i32_0 = arith.constant 0 : i32
    return %c0_i32, %arg0 : i32, i32
  }
  func.func @transform_1(%arg0: i32) -> (i32, i32) {
    %c0_i32 = arith.constant 0 : i32
    %c0_i32_0 = arith.constant 0 : i32
    return %c0_i32, %arg0 : i32, i32
  }
  func.func @transform_2(%arg0: i32) -> (i32, i32) {
    %c0_i32 = arith.constant 0 : i32
    %c0_i32_0 = arith.constant 0 : i32
    %c0_i32_1 = arith.constant 0 : i32
    return %c0_i32, %c0_i32_0 : i32, i32
  }
  func.func @transform_3(%arg0: i32) -> (i32, i32) {
    %c0_i32 = arith.constant 0 : i32
    %c0_i32_0 = arith.constant 0 : i32
    return %c0_i32, %arg0 : i32, i32
  }
}

</mosaic_0001>

<bundles_post_ra>
// kernel: tpu_custom_call.1
= control target key start
LH: loop header
LB: loop body
LE: loop exit
PB: predicated region body
PF: predicated region fallthrough
CT: control target
= control target key end

     0   :  { %v148_v1 = vmov 0   ;;  %s197_s0 = inlined_call_operand.vmem [shape: f32[5,8], index: 0, kind: input, shape index: {}]   ;;  %s198_s1 = inlined_call_operand.vmem [shape: s8[1,8], index: 1, kind: input, shape index: {}]   ;;  %s199_s2 = inlined_call_operand.vmem [shape: f32[5,1], index: 2, kind: input, shape index: {}]   ;;  %s200_s3 = inlined_call_operand.hbm [shape: f32[1,128], index: 3, kind: output, shape index: {}]  }
   0x1   :  { %v18_v0 = vld [vmem:[%s199_s2] sm:$0x1f]  ;;  %117 = vset.pattern.permute.xlu0 %v148_v1 }
   0x2   :  { %8 = vsyncpa [#allocation3], 0  ;;  %54 = vperm.xlu0 %117, %v18_v0   ;;  %vm26_vm0 = vcmask 1044480   ;;  %v15_v2 = vld [vmem:[%s197_s0] sm:$0x1f]  ;;  %v19_v13 = vlaneseq  ;;  %vm84_vm3 = vcmask 1040384  }
   0x3   :  { %v27_v3 = vsel %vm26_vm0, %v15_v2, -inf  ;;  %v16_v17 = vld [vmem:[%s198_s1] sm:$0x1]  ;;  %s149_s0 = smov [#allocation2]  }
   0x4   :  { %v28_v4 = vrot.slane %v27_v3, 4  ;;  %v20_v15 = vshrl.u32 %v19_v13, 7  ;;  %v17_v19 = vunpack.c.0.s8 %v16_v17  ;;  %v78_v52 = vand.u32 127, %v19_v13  ;;  %s105_s1 = sshll.u32 %s149_s0, 4  ;;  %s106_s1 = int_to_ptr.vmem [resolvable:$true] %s105_s1 }
   0x5   :  { %s124_s18 = scalar_lea.vmem %s106_s1, 16  ;;  %s128_s19 = scalar_lea.vmem %s106_s1, 32 }
   0x6   :  { %v29_v5 = vmax.f32 %v27_v3, %v28_v4  ;;  %v23_v18 = vsub.s32 0, %v20_v15  ;;  %vm82_vm2 = vcmp.lt.s32.totalorder %v78_v52, 8  ;;  %vm95_vm4 = vcmp.eq.s32.totalorder %v78_v52, 0  ;;  %p125_p0 = scmp.ne.s32.totalorder %s106_s1, %s124_s18  ;;  %p129_p1 = scmp.lt.s32.totalorder %s106_s1, %s106_s1 }
   0x7   :  { %p130_p2 = scmp.lt.s32.totalorder %s128_s19, %s124_s18 }
   0x8   :  { %v30_v6 = vrot.slane %v29_v5, 2  ;;  %v24_v21 = vrot.slane %v17_v19, %v23_v18 }
   0x9   :  { %p131_p3 = por %p130_p2, %p129_p1 }
   0xa   :  { %v31_v7 = vmax.f32 %v29_v5, %v30_v6  ;;  %vm25_vm1 = vcmp.eq.s32.totalorder %v20_v15, %v24_v21 }
   0xb   :  { %v44_v24 = vsel %vm25_vm1, %v15_v2, 0.0  ;;  %p132_p4 = pnand %p131_p3, %p125_p0 }
   0xc   :  { %v32_v8 = vrot.slane %v31_v7, 1  ;;  %v45_v26 = vsel %vm26_vm0, %v44_v24, 0.0 }
   0xd   :  { %v46_v28 = vrot.slane %v45_v26, 4 }
   0xe   :  { %v33_v9 = vmax.f32 %v31_v7, %v32_v8 }
   0xf   :  { %v47_v29 = vadd.f32 %v46_v28, %v45_v26 }
  0x10   :  { %v34_v10 = vsub.f32 %v15_v2, %v33_v9 }
  0x11   :  { %v48_v30 = vrot.slane %v47_v29, 2 }
  0x12   :  { %v35_v11 = vmul.f32 1.442695, %v34_v10 }
  0x13   :  { %v49_v31 = vadd.f32 %v48_v30, %v47_v29 }
  0x14   :  { %118 = vpow2.f32 %v35_v11 }
  0x15   :  { %v50_v33 = vrot.slane %v49_v31, 1 }
  0x17   :  { %v51_v35 = vadd.f32 %v50_v33, %v49_v31 }
  0x1e   :  { %v119_v12 = vpop.eup %118 }
  0x1f   :  { %v37_v14 = vsel %vm26_vm0, %v119_v12, 0.0 }
  0x20   :  { %v38_v16 = vrot.slane %v37_v14, 4 }
  0x22   :  { %v39_v20 = vadd.f32 %v38_v16, %v37_v14 }
  0x24   :  { %v40_v22 = vrot.slane %v39_v20, 2 }
  0x26   :  { %v41_v23 = vadd.f32 %v40_v22, %v39_v20 }
  0x28   :  { %v42_v25 = vrot.slane %v41_v23, 1 }
  0x2a   :  { %v43_v27 = vadd.f32 %v42_v25, %v41_v23 }
  0x2c   :  { %120 = vlog2.f32 %v43_v27 }
  0x36   :  { %v121_v32 = vpop.eup %120 }
  0x37   :  { %v66_v34 = vmul.f32 0.6931472, %v121_v32 }
  0x39   :  { %v67_v36 = vadd.f32 %v66_v34, %v33_v9 }
  0x3b   :  { %v68_v37 = vsub.f32 %v67_v36, %v51_v35 }
  0x3d   :  { %v69_v38 = vsub.f32 0.0, %v68_v37 }
  0x3f   :  { %v70_v39 = vmul.f32 1.442695, %v69_v38 }
  0x41   :  { %122 = vpow2.f32 %v70_v39 }
  0x4b   :  { %v123_v40 = vpop.eup %122 }
  0x4c   :  { %v72_v45 = vsub.f32 1.0, %v123_v40 }
  0x4e   :  { %v73_v48 = vmax.f32 %v72_v45, 0.0 }
  0x50   :  { %v74_v51 = vmul.f32 %v73_v48, %v73_v48 }
  0x81   :  { %v55_v41 = vpop.permute.xlu0 %54 }
  0x82   :  { %v57_v42 = vsel %vm25_vm1, %v55_v41, 0.0 }
  0x83   :  { %v58_v43 = vsel %vm26_vm0, %v57_v42, 0.0 }
  0x84   :  { %v59_v44 = vrot.slane %v58_v43, 4 }
  0x86   :  { %v60_v46 = vadd.f32 %v59_v44, %v58_v43 }
  0x88   :  { %v61_v47 = vrot.slane %v60_v46, 2 }
  0x8a   :  { %v62_v49 = vadd.f32 %v61_v47, %v60_v46 }
  0x8c   :  { %v63_v50 = vrot.slane %v62_v49, 1 }
  0x8e   :  { %v64_v53 = vadd.f32 %v63_v50, %v62_v49 }
  0x90   :  { %v75_v54 = vmul.f32 %v74_v51, %v64_v53 }
  0x92   :  { %v76_v55 = vmul.f32 %v75_v54, %v68_v37 }
  0x94   :  { %v83_v56 = vsel %vm82_vm2, %v76_v55, 0.0 }
  0x95   :  { %v85_v57 = vsel %vm84_vm3, %v83_v56, 0.0 }
  0x96   :  { %86 = vadd.xlane.f32.xlu0 %v85_v57 }
 0x123   :  { %v87_v58 = vpop.xlane.xlu0 %86 }
 0x124   :  { %v88_v59 = vrot.slane %v87_v58, 4 }
 0x126   :  { %v89_v60 = vadd.f32 %v88_v59, %v87_v58 }
 0x128   :  { %v90_v61 = vrot.slane %v89_v60, 2 }
 0x12a   :  { %v91_v62 = vadd.f32 %v90_v61, %v89_v60 }
 0x12c   :  { %v92_v63 = vrot.slane %v91_v62, 1 }
 0x12e   :  { %v93_v0 = vadd.f32 %v92_v63, %v91_v62 }
 0x130   :  { %113 = vpush %v93_v0 }
 0x161   :  { %s114_s17 = spop %113 }
 0x162   :  { %v96_v1 = vstv %s114_s17 }
 0x163   :  { %v97_v2 = vsel %vm95_vm4, %v96_v1, 0.0 }
 0x164   :  { %98 = vst [vmem:[#allocation2] sm:$0x1] %v97_v2 }
 0x165   :  { %135 = shalt.err (!%p132_p4)
}
 0x166   :  { %s136_s22 = scalar_lea.hbm %s200_s3, 16 }
 0x167   :  { %p137_p5 = scmp.ne.s32.totalorder %s200_s3, %s136_s22  ;;  %p140_p6 = scmp.lt.u32.totalorder %s136_s22, %s200_s3 }
 0x169   :  { %p142_p7 = pnand %p140_p6, %p137_p5 }
 0x16b   :  { %145 = shalt.err (!%p142_p7)
}
 0x16c   :  { %108 = dma.vmem_to_hbm [thread:$0]  %s106_s1, 16, %s200_s3, [#allocation3]  }
 0x16d   :  { %146 = dma.done.wait [#allocation3], 16  }
 0x16e   :  { %147 = vsyncadd [#allocation3], 4294967280 }
 0x16f   :  { %112 = vsyncpa [#allocation3], 1 }

</bundles_post_ra>
